<compile_context>
chip_gen: v5e
topology: v5e:2x2
jax: 0.10.0
libtpu: 0.0.40
codegen_flags: <defaults>
</compile_context>

<pallas_src>
import functools
import math

import jax
import jax.numpy as jnp
from jax.experimental import pallas as pl
from jax.experimental.pallas import tpu as pltpu


# ----------------------------- in-kernel math -------------------------------
def _mish(x, *, approx_recip):
    # mish(x) = x * tanh(softplus(x)); tanh(log u) = (u^2-1)/(u^2+1), u = 1+e^x.
    # One EUP exp instead of exp + log1p + tanh.
    u = 1.0 + jnp.exp(jnp.minimum(x, 20.0))
    u2 = u * u
    if approx_recip:
        t = (u2 - 1.0) * pl.reciprocal(u2 + 1.0, approx=True)   # EUP vrcp slot
    else:
        t = (u2 - 1.0) / (u2 + 1.0)                              # exact (f32 path)
    return jnp.where(x > 20.0, x, x * t)


# ------------------------------ fused kernel --------------------------------
def _fused_denoiser_kernel(
    four_ref, cond_ref, x_ref,                  # activations (B, *)
    t1w_ref, t1b_ref, c1w_ref, c1b_ref,         # time/cond MLP layer 1
    t2w_ref, c2w_ref,                           # time/cond MLP layer 2 (biases folded)
    projw_ref, projb_ref,                       # block-diagonal fused x/cond projection
    blkw_ref, blkaux_ref,                       # residual blocks: (L,2W,2W), (L,3,2W)
    fw_ref, fb_ref,                             # final linear
    o_ref,
    *, num_layers, d_in_p, dim_t, approx_recip):

    def mm(a, w):
        # Weights are already stored in the compute dtype; only the activation
        # is cast at the dot.  Accumulate in f32 on the MXU.
        if a.dtype != w.dtype:
            a = a.astype(w.dtype)
        return jnp.dot(a, w, preferred_element_type=jnp.float32)

    # time_mlp: Linear -> Mish -> Linear   (2nd-layer bias folded into projb)
    ht = _mish(mm(four_ref[...], t1w_ref[...]) + t1b_ref[...],
               approx_recip=approx_recip)
    t_emb = mm(ht, t2w_ref[...])                                    # (B, dim_t)

    # cond_mlp: Linear -> Mish -> Linear   (2nd-layer bias folded into projb)
    # TODO(synk): training-mode Bernoulli cfg-dropout mask on cond not
    # implemented (eval-mode forward, cond always provided).
    hc = _mish(mm(cond_ref[...], c1w_ref[...]) + c1b_ref[...],
               approx_recip=approx_recip)
    c_emb = mm(hc, c2w_ref[...])                                    # (B, dim_t)

    # Fused projections: h = [x | c_emb | t_emb] @ P + b with P block-diagonal
    # ([[xp_w, 0], [0, cp_w]]) built host-side.  Three sublane-aligned row-slice
    # dots write the (B, 2W) carry lane-dense — no in-kernel concatenates.
    h = (mm(x_ref[...], projw_ref[0:d_in_p, :])
         + mm(c_emb, projw_ref[d_in_p:d_in_p + dim_t, :])
         + mm(t_emb, projw_ref[d_in_p + dim_t:d_in_p + 2 * dim_t, :])
         + projb_ref[...])                                          # (B, 2W) f32

    # Residual blocks: h <- h + relu(LayerNorm(h)) @ W_l + b_l.
    # Weights are fully VMEM-resident; static unroll over the small layer count
    # replaces the old per-layer grid (no ~0.35us/step pipeline overhead, no
    # pl.when branching, and the whole loop is visible to the scheduler).
    for l in range(num_layers):
        mu = jnp.mean(h, axis=-1, keepdims=True)
        var = jnp.mean(jnp.square(h - mu), axis=-1, keepdims=True)  # biased var
        ln = (h - mu) * jax.lax.rsqrt(var + 1e-5)                   # LN eps=1e-5
        ln = ln * blkaux_ref[l, 0:1, :] + blkaux_ref[l, 1:2, :]     # gamma, beta
        ln = jnp.maximum(ln, 0.0)                                   # relu
        h = h + mm(ln, blkw_ref[l]) + blkaux_ref[l, 2:3, :]

    o_ref[...] = (mm(jnp.maximum(h, 0.0), fw_ref[...]) + fb_ref[...]).astype(o_ref.dtype)


# --------------------------- parameter construction -------------------------
def _init_linear(key, fan_in, fan_out):
    kw, kb = jax.random.split(key)
    bound = 1.0 / math.sqrt(fan_in)
    w = jax.random.uniform(kw, (fan_in, fan_out), jnp.float32, -bound, bound)
    b = jax.random.uniform(kb, (1, fan_out), jnp.float32, -bound, bound)
    return w, b


def init_params(key, *, d_in, cond_dim, dim_t, mlp_width, num_layers,
                learned_sinusoidal_dim):
    """Raw, PyTorch-faithful parameters (Linear weights stored as (in, out))."""
    half_dim = learned_sinusoidal_dim // 2
    fourier_dim = learned_sinusoidal_dim + 1
    keys = jax.random.split(key, 8 + num_layers)
    p = {}
    # RandomOrLearnedSinusoidalPosEmb (random fourier features, non-learned)
    p["posemb_w"] = jax.random.normal(keys[0], (half_dim,), jnp.float32)
    # time_mlp: Linear(fourier_dim, 4*dim_t) -> Mish -> Linear(4*dim_t, dim_t)
    p["t1_w"], p["t1_b"] = _init_linear(keys[1], fourier_dim, dim_t * 4)
    p["t2_w"], p["t2_b"] = _init_linear(keys[2], dim_t * 4, dim_t)
    # cond_mlp: Linear(cond_dim, 2*dim_t) -> Mish -> Linear(2*dim_t, dim_t)
    p["c1_w"], p["c1_b"] = _init_linear(keys[3], cond_dim, dim_t * 2)
    p["c2_w"], p["c2_b"] = _init_linear(keys[4], dim_t * 2, dim_t)
    # ResidualMLP
    p["xp_w"], p["xp_b"] = _init_linear(keys[5], d_in, mlp_width)
    p["cp_w"], p["cp_b"] = _init_linear(keys[6], dim_t * 2, mlp_width)
    W2 = mlp_width * 2
    blk_w, blk_b = [], []
    for i in range(num_layers):
        w, b = _init_linear(keys[7 + i], W2, W2)
        blk_w.append(w)
        blk_b.append(b)
    p["blk_w"] = jnp.stack(blk_w)                                  # (L, 2W, 2W)
    p["blk_b"] = jnp.stack(blk_b)                                  # (L, 1, 2W)
    p["blk_gamma"] = jnp.ones((num_layers, 1, W2), jnp.float32)
    p["blk_beta"] = jnp.zeros((num_layers, 1, W2), jnp.float32)
    p["f_w"], p["f_b"] = _init_linear(keys[7 + num_layers], W2, d_in)
    return p


def _pad_rows(w, mult=8):
    pad = (-w.shape[0]) % mult
    return jnp.pad(w, ((0, pad), (0, 0))) if pad else w


def prepare_params(raw, *, compute_dtype=jnp.float32):
    """Kernel-side parameter layout.

    * Matmul weights stored in HBM in `compute_dtype` (bf16 halves weight DMA;
      the kernel never casts a weight).  Biases / LN params stay f32.
    * Small contraction dims (fourier_dim=17, cond_dim) zero-padded to x8.
    * x/cond projections fused into one block-diagonal weight + one bias, with
      the t2/c2 output biases folded into that bias host-side.
    * Per-layer gamma/beta/bias packed into a single (L, 3, 2W) array.
    """
    wdt = compute_dtype
    dim_t = raw["t2_w"].shape[1]
    W = raw["xp_w"].shape[1]
    W2 = 2 * W

    p = {"posemb_w": raw["posemb_w"]}
    p["t1_w"] = _pad_rows(raw["t1_w"]).astype(wdt)
    p["c1_w"] = _pad_rows(raw["c1_w"]).astype(wdt)
    p["t1_b"] = raw["t1_b"]
    p["c1_b"] = raw["c1_b"]
    p["t2_w"] = raw["t2_w"].astype(wdt)
    p["c2_w"] = raw["c2_w"].astype(wdt)

    xp_w = _pad_rows(raw["xp_w"])                                  # (d_in_p, W)
    d_in_p = xp_w.shape[0]
    cp_w = raw["cp_w"]                                             # (2*dim_t, W)
    proj_w = jnp.zeros((d_in_p + 2 * dim_t, W2), jnp.float32)
    proj_w = proj_w.at[:d_in_p, :W].set(xp_w)                      # x -> cols [0:W]
    proj_w = proj_w.at[d_in_p:, W:].set(cp_w)                      # [c|t] -> cols [W:2W]
    p["proj_w"] = proj_w.astype(wdt)
    # Fold the cond/time 2nd-layer biases through cp_w into the projection bias.
    cp_bias = raw["cp_b"] + raw["c2_b"] @ cp_w[:dim_t] + raw["t2_b"] @ cp_w[dim_t:]
    p["proj_b"] = jnp.concatenate([raw["xp_b"], cp_bias], axis=-1)  # (1, 2W) f32

    p["blk_w"] = raw["blk_w"].astype(wdt)                           # (L, 2W, 2W)
    p["blk_aux"] = jnp.concatenate(
        [raw["blk_gamma"], raw["blk_beta"], raw["blk_b"]], axis=1)  # (L, 3, 2W) f32
    p["f_w"] = raw["f_w"].astype(wdt)
    p["f_b"] = raw["f_b"]
    return p


# ------------------------------- forward pass --------------------------------
def denoiser_forward(params, x, timesteps, cond):
    """ResidualMLPDenoiser.forward (eval mode, cond provided) — one grid-less
    pallas_call with all weights VMEM-resident and the layer loop unrolled."""
    B, d_in = x.shape
    t = timesteps.astype(jnp.float32)

    # RandomOrLearnedSinusoidalPosEmb: tiny elementwise glue, kept in plain JAX.
    freqs = t[:, None] * params["posemb_w"][None, :] * (2.0 * math.pi)
    fouriered = jnp.concatenate([t[:, None], jnp.sin(freqs), jnp.cos(freqs)], axis=-1)

    def pad_cols(a, k):
        return jnp.pad(a, ((0, 0), (0, k - a.shape[1]))) if a.shape[1] != k else a

    # Zero-pad small contraction dims to the row counts baked into the weights.
    fouriered = pad_cols(fouriered, params["t1_w"].shape[0])
    cond_p = pad_cols(cond, params["c1_w"].shape[0])

    L, W2, _ = params["blk_w"].shape
    dim_t = params["t2_w"].shape[1]
    d_in_p = params["proj_w"].shape[0] - 2 * dim_t
    x_p = pad_cols(x, d_in_p)

    inputs = (
        fouriered, cond_p, x_p,
        params["t1_w"], params["t1_b"], params["c1_w"], params["c1_b"],
        params["t2_w"], params["c2_w"],
        params["proj_w"], params["proj_b"],
        params["blk_w"], params["blk_aux"],
        params["f_w"], params["f_b"],
    )

    # Advisory cost estimate so XLA schedules around the fused custom call.
    fdim_p = params["t1_w"].shape[0]
    cdim_p = params["c1_w"].shape[0]
    flops = 2 * B * (fdim_p * 4 * dim_t + 4 * dim_t * dim_t
                     + cdim_p * 2 * dim_t + 2 * dim_t * dim_t
                     + (d_in_p + 2 * dim_t) * W2 + L * W2 * W2 + W2 * d_in)
    transcendentals = B * 6 * dim_t
    bytes_accessed = sum(int(a.size) * a.dtype.itemsize for a in inputs) + B * d_in * 4
    cost = pl.CostEstimate(flops=int(flops), transcendentals=int(transcendentals),
                           bytes_accessed=int(bytes_accessed))

    # Everything fits in VMEM at this config.  For large mlp_width/num_layers
    # switch back to a grid=(L,) per-layer streaming spec (previous revision)
    # and size vmem_limit_bytes for the double-buffered blk_w tile instead
    # (v5e scoped default is only 16 MiB; v7x physical VMEM is 64 MiB).
    vmem_limit = int(min(max(2 * bytes_accessed + (4 << 20), 16 << 20), 48 << 20))

    kernel = functools.partial(
        _fused_denoiser_kernel,
        num_layers=int(L), d_in_p=int(d_in_p), dim_t=int(dim_t),
        approx_recip=(params["blk_w"].dtype != jnp.float32))

    # NOTE: for large batches, add a leading batch-tile grid axis marked
    # "parallel" (or core_map) to use both v7x TensorCores; at B=8 it is
    # pure overhead, so the kernel is single-invocation here.
    return pl.pallas_call(
        kernel,
        out_shape=jax.ShapeDtypeStruct((B, d_in), jnp.float32),
        compiler_params=pltpu.CompilerParams(vmem_limit_bytes=vmem_limit),
        cost_estimate=cost,
    )(*inputs)


# ------------------------- pure-JAX reference (check) ------------------------
def _reference_forward(params, x, timesteps, cond):
    t = timesteps.astype(jnp.float32)
    freqs = t[:, None] * params["posemb_w"][None, :] * (2.0 * math.pi)
    fouriered = jnp.concatenate([t[:, None], jnp.sin(freqs), jnp.cos(freqs)], axis=-1)
    mish = lambda v: v * jnp.tanh(jax.nn.softplus(v))
    t_emb = mish(fouriered @ params["t1_w"] + params["t1_b"]) @ params["t2_w"] + params["t2_b"]
    c_emb = mish(cond @ params["c1_w"] + params["c1_b"]) @ params["c2_w"] + params["c2_b"]
    t_full = jnp.concatenate([c_emb, t_emb], axis=-1)
    xp = x @ params["xp_w"] + params["xp_b"]
    cp = t_full @ params["cp_w"] + params["cp_b"]
    h = jnp.concatenate([xp, cp], axis=-1)
    for l in range(params["blk_w"].shape[0]):
        mu = jnp.mean(h, -1, keepdims=True)
        var = jnp.mean(jnp.square(h - mu), -1, keepdims=True)
        ln = (h - mu) / jnp.sqrt(var + 1e-5) * params["blk_gamma"][l] + params["blk_beta"][l]
        h = h + jnp.maximum(ln, 0.0) @ params["blk_w"][l] + params["blk_b"][l]
    return jnp.maximum(h, 0.0) @ params["f_w"] + params["f_b"]


# ----------------------------------- main ------------------------------------
if __name__ == "__main__":
    # Small config consistent with the module's constructor.
    B, D_IN, COND_DIM = 8, 16, 8
    DIM_T, MLP_WIDTH, NUM_LAYERS, SINU_DIM = 32, 64, 2, 16

    key = jax.random.PRNGKey(0)
    kp, kx, kt, kc = jax.random.split(key, 4)
    raw = init_params(kp, d_in=D_IN, cond_dim=COND_DIM, dim_t=DIM_T,
                      mlp_width=MLP_WIDTH, num_layers=NUM_LAYERS,
                      learned_sinusoidal_dim=SINU_DIM)

    x = jax.random.normal(kx, (B, D_IN), jnp.float32)
    timesteps = jax.random.uniform(kt, (B,), jnp.float32, 0.0, 1.0)
    cond = jax.random.normal(kc, (B, COND_DIM), jnp.float32)

    ref = jax.block_until_ready(_reference_forward(raw, x, timesteps, cond))
    fwd = jax.jit(denoiser_forward)

    # f32 path (matches the PyTorch module numerics).
    p_f32 = prepare_params(raw, compute_dtype=jnp.float32)
    out = jax.block_until_ready(fwd(p_f32, x, timesteps, cond))
    assert out.shape == (B, D_IN) and out.dtype == jnp.float32
    assert jnp.allclose(out, ref, atol=1e-4, rtol=1e-4), "mismatch vs reference (f32)"

    # bf16-weight path: weights stored in HBM in the MXU compute dtype.
    p_bf16 = prepare_params(raw, compute_dtype=jnp.bfloat16)
    out_bf16 = jax.block_until_ready(fwd(p_bf16, x, timesteps, cond))
    assert out_bf16.shape == (B, D_IN)
    assert jnp.allclose(out_bf16, ref, atol=1e-1, rtol=1e-1), "mismatch vs reference (bf16)"

    print("KERNEL_OK")
</pallas_src>

<mosaic_0001>
module attributes {stable_mosaic.version = 11 : i64} {
  func.func @_fused_denoiser_kernel(%arg0: memref<8x24xf32, #tpu.memory_space<vmem>>, %arg1: memref<8x8xf32, #tpu.memory_space<vmem>>, %arg2: memref<8x16xf32, #tpu.memory_space<vmem>>, %arg3: memref<24x128xf32, #tpu.memory_space<vmem>>, %arg4: memref<1x128xf32, #tpu.memory_space<vmem>>, %arg5: memref<8x64xf32, #tpu.memory_space<vmem>>, %arg6: memref<1x64xf32, #tpu.memory_space<vmem>>, %arg7: memref<128x32xf32, #tpu.memory_space<vmem>>, %arg8: memref<64x32xf32, #tpu.memory_space<vmem>>, %arg9: memref<80x128xf32, #tpu.memory_space<vmem>>, %arg10: memref<1x128xf32, #tpu.memory_space<vmem>>, %arg11: memref<2x128x128xf32, #tpu.memory_space<vmem>>, %arg12: memref<2x3x128xf32, #tpu.memory_space<vmem>>, %arg13: memref<128x16xf32, #tpu.memory_space<vmem>>, %arg14: memref<1x16xf32, #tpu.memory_space<vmem>>, %arg15: memref<8x16xf32, #tpu.memory_space<vmem>>) attributes {dimension_semantics = [], scalar_prefetch = 0 : i64, scratch_operands = 0 : i64, tpu.core_type = #tpu.core_type<tc>} {
    %c0 = arith.constant 0 : index
    %c0_0 = arith.constant 0 : index
    %0 = vector.load %arg0[%c0, %c0_0] : memref<8x24xf32, #tpu.memory_space<vmem>>, vector<8x24xf32>
    %c0_1 = arith.constant 0 : index
    %c0_2 = arith.constant 0 : index
    %1 = vector.load %arg3[%c0_1, %c0_2] : memref<24x128xf32, #tpu.memory_space<vmem>>, vector<24x128xf32>
    %cst = arith.constant dense<0.000000e+00> : vector<8x128xf32>
    %2 = tpu.matmul %0, %1, %cst {dimension_numbers = #tpu.dot_dimension_numbers<[1], [0], [0], [1], [0, 0, 1, 1], [], []>} : vector<8x24xf32>, vector<24x128xf32>, vector<8x128xf32> -> vector<8x128xf32>
    %c0_3 = arith.constant 0 : index
    %c0_4 = arith.constant 0 : index
    %3 = vector.load %arg4[%c0_3, %c0_4] : memref<1x128xf32, #tpu.memory_space<vmem>>, vector<1x128xf32>
    %4 = vector.broadcast %3 : vector<1x128xf32> to vector<8x128xf32>
    %5 = arith.addf %2, %4 : vector<8x128xf32>
    %cst_5 = arith.constant 2.000000e+01 : f32
    %6 = vector.broadcast %cst_5 : f32 to vector<8x128xf32>
    %7 = arith.minimumf %5, %6 : vector<8x128xf32>
    %8 = math.exp %7 : vector<8x128xf32>
    %cst_6 = arith.constant 1.000000e+00 : f32
    %9 = vector.broadcast %cst_6 : f32 to vector<8x128xf32>
    %10 = arith.addf %9, %8 : vector<8x128xf32>
    %11 = arith.mulf %10, %10 : vector<8x128xf32>
    %cst_7 = arith.constant 1.000000e+00 : f32
    %12 = vector.broadcast %cst_7 : f32 to vector<8x128xf32>
    %13 = arith.subf %11, %12 : vector<8x128xf32>
    %cst_8 = arith.constant 1.000000e+00 : f32
    %14 = vector.broadcast %cst_8 : f32 to vector<8x128xf32>
    %15 = arith.addf %11, %14 : vector<8x128xf32>
    %16 = arith.divf %13, %15 : vector<8x128xf32>
    %cst_9 = arith.constant 2.000000e+01 : f32
    %17 = vector.broadcast %cst_9 : f32 to vector<8x128xf32>
    %18 = arith.cmpf ogt, %5, %17 : vector<8x128xf32>
    %19 = arith.mulf %5, %16 : vector<8x128xf32>
    %20 = arith.select %18, %5, %19 : vector<8x128xi1>, vector<8x128xf32>
    %c0_10 = arith.constant 0 : index
    %c0_11 = arith.constant 0 : index
    %21 = vector.load %arg7[%c0_10, %c0_11] : memref<128x32xf32, #tpu.memory_space<vmem>>, vector<128x32xf32>
    %cst_12 = arith.constant dense<0.000000e+00> : vector<8x32xf32>
    %22 = tpu.matmul %20, %21, %cst_12 {dimension_numbers = #tpu.dot_dimension_numbers<[1], [0], [0], [1], [0, 0, 1, 1], [], []>} : vector<8x128xf32>, vector<128x32xf32>, vector<8x32xf32> -> vector<8x32xf32>
    %c0_13 = arith.constant 0 : index
    %c0_14 = arith.constant 0 : index
    %23 = vector.load %arg1[%c0_13, %c0_14] : memref<8x8xf32, #tpu.memory_space<vmem>>, vector<8x8xf32>
    %c0_15 = arith.constant 0 : index
    %c0_16 = arith.constant 0 : index
    %24 = vector.load %arg5[%c0_15, %c0_16] : memref<8x64xf32, #tpu.memory_space<vmem>>, vector<8x64xf32>
    %cst_17 = arith.constant dense<0.000000e+00> : vector<8x64xf32>
    %25 = tpu.matmul %23, %24, %cst_17 {dimension_numbers = #tpu.dot_dimension_numbers<[1], [0], [0], [1], [0, 0, 1, 1], [], []>} : vector<8x8xf32>, vector<8x64xf32>, vector<8x64xf32> -> vector<8x64xf32>
    %c0_18 = arith.constant 0 : index
    %c0_19 = arith.constant 0 : index
    %26 = vector.load %arg6[%c0_18, %c0_19] : memref<1x64xf32, #tpu.memory_space<vmem>>, vector<1x64xf32>
    %27 = vector.broadcast %26 : vector<1x64xf32> to vector<8x64xf32>
    %28 = arith.addf %25, %27 : vector<8x64xf32>
    %cst_20 = arith.constant 2.000000e+01 : f32
    %29 = vector.broadcast %cst_20 : f32 to vector<8x64xf32>
    %30 = arith.minimumf %28, %29 : vector<8x64xf32>
    %31 = math.exp %30 : vector<8x64xf32>
    %cst_21 = arith.constant 1.000000e+00 : f32
    %32 = vector.broadcast %cst_21 : f32 to vector<8x64xf32>
    %33 = arith.addf %32, %31 : vector<8x64xf32>
    %34 = arith.mulf %33, %33 : vector<8x64xf32>
    %cst_22 = arith.constant 1.000000e+00 : f32
    %35 = vector.broadcast %cst_22 : f32 to vector<8x64xf32>
    %36 = arith.subf %34, %35 : vector<8x64xf32>
    %cst_23 = arith.constant 1.000000e+00 : f32
    %37 = vector.broadcast %cst_23 : f32 to vector<8x64xf32>
    %38 = arith.addf %34, %37 : vector<8x64xf32>
    %39 = arith.divf %36, %38 : vector<8x64xf32>
    %cst_24 = arith.constant 2.000000e+01 : f32
    %40 = vector.broadcast %cst_24 : f32 to vector<8x64xf32>
    %41 = arith.cmpf ogt, %28, %40 : vector<8x64xf32>
    %42 = arith.mulf %28, %39 : vector<8x64xf32>
    %43 = arith.select %41, %28, %42 : vector<8x64xi1>, vector<8x64xf32>
    %c0_25 = arith.constant 0 : index
    %c0_26 = arith.constant 0 : index
    %44 = vector.load %arg8[%c0_25, %c0_26] : memref<64x32xf32, #tpu.memory_space<vmem>>, vector<64x32xf32>
    %cst_27 = arith.constant dense<0.000000e+00> : vector<8x32xf32>
    %45 = tpu.matmul %43, %44, %cst_27 {dimension_numbers = #tpu.dot_dimension_numbers<[1], [0], [0], [1], [0, 0, 1, 1], [], []>} : vector<8x64xf32>, vector<64x32xf32>, vector<8x32xf32> -> vector<8x32xf32>
    %c0_28 = arith.constant 0 : index
    %c0_29 = arith.constant 0 : index
    %46 = vector.load %arg2[%c0_28, %c0_29] : memref<8x16xf32, #tpu.memory_space<vmem>>, vector<8x16xf32>
    %c0_30 = arith.constant 0 : index
    %c0_31 = arith.constant 0 : index
    %47 = vector.load %arg9[%c0_30, %c0_31] : memref<80x128xf32, #tpu.memory_space<vmem>>, vector<16x128xf32>
    %cst_32 = arith.constant dense<0.000000e+00> : vector<8x128xf32>
    %48 = tpu.matmul %46, %47, %cst_32 {dimension_numbers = #tpu.dot_dimension_numbers<[1], [0], [0], [1], [0, 0, 1, 1], [], []>} : vector<8x16xf32>, vector<16x128xf32>, vector<8x128xf32> -> vector<8x128xf32>
    %c16 = arith.constant 16 : index
    %c0_33 = arith.constant 0 : index
    %49 = vector.load %arg9[%c16, %c0_33] : memref<80x128xf32, #tpu.memory_space<vmem>>, vector<32x128xf32>
    %cst_34 = arith.constant dense<0.000000e+00> : vector<8x128xf32>
    %50 = tpu.matmul %45, %49, %cst_34 {dimension_numbers = #tpu.dot_dimension_numbers<[1], [0], [0], [1], [0, 0, 1, 1], [], []>} : vector<8x32xf32>, vector<32x128xf32>, vector<8x128xf32> -> vector<8x128xf32>
    %51 = arith.addf %48, %50 : vector<8x128xf32>
    %c48 = arith.constant 48 : index
    %c0_35 = arith.constant 0 : index
    %52 = vector.load %arg9[%c48, %c0_35] : memref<80x128xf32, #tpu.memory_space<vmem>>, vector<32x128xf32>
    %cst_36 = arith.constant dense<0.000000e+00> : vector<8x128xf32>
    %53 = tpu.matmul %22, %52, %cst_36 {dimension_numbers = #tpu.dot_dimension_numbers<[1], [0], [0], [1], [0, 0, 1, 1], [], []>} : vector<8x32xf32>, vector<32x128xf32>, vector<8x128xf32> -> vector<8x128xf32>
    %54 = arith.addf %51, %53 : vector<8x128xf32>
    %c0_37 = arith.constant 0 : index
    %c0_38 = arith.constant 0 : index
    %55 = vector.load %arg10[%c0_37, %c0_38] : memref<1x128xf32, #tpu.memory_space<vmem>>, vector<1x128xf32>
    %56 = vector.broadcast %55 : vector<1x128xf32> to vector<8x128xf32>
    %57 = arith.addf %54, %56 : vector<8x128xf32>
    %cst_39 = arith.constant dense<0.000000e+00> : vector<8xf32>
    %58 = vector.multi_reduction <add>, %57, %cst_39 [1] : vector<8x128xf32> to vector<8xf32>
    %59 = vector.shape_cast %58 : vector<8xf32> to vector<8x1xf32>
    %cst_40 = arith.constant 1.280000e+02 : f32
    %60 = vector.broadcast %cst_40 : f32 to vector<8x1xf32>
    %61 = arith.divf %59, %60 : vector<8x1xf32>
    %62 = vector.broadcast %61 : vector<8x1xf32> to vector<8x128xf32>
    %63 = arith.subf %57, %62 : vector<8x128xf32>
    %64 = arith.mulf %63, %63 : vector<8x128xf32>
    %cst_41 = arith.constant dense<0.000000e+00> : vector<8xf32>
    %65 = vector.multi_reduction <add>, %64, %cst_41 [1] : vector<8x128xf32> to vector<8xf32>
    %66 = vector.shape_cast %65 : vector<8xf32> to vector<8x1xf32>
    %cst_42 = arith.constant 1.280000e+02 : f32
    %67 = vector.broadcast %cst_42 : f32 to vector<8x1xf32>
    %68 = arith.divf %66, %67 : vector<8x1xf32>
    %69 = vector.broadcast %61 : vector<8x1xf32> to vector<8x128xf32>
    %70 = arith.subf %57, %69 : vector<8x128xf32>
    %cst_43 = arith.constant 9.99999974E-6 : f32
    %71 = vector.broadcast %cst_43 : f32 to vector<8x1xf32>
    %72 = arith.addf %68, %71 : vector<8x1xf32>
    %73 = math.rsqrt %72 : vector<8x1xf32>
    %74 = vector.broadcast %73 : vector<8x1xf32> to vector<8x128xf32>
    %75 = arith.mulf %70, %74 : vector<8x128xf32>
    %c0_44 = arith.constant 0 : index
    %c0_45 = arith.constant 0 : index
    %c0_46 = arith.constant 0 : index
    %76 = vector.load %arg12[%c0_44, %c0_45, %c0_46] : memref<2x3x128xf32, #tpu.memory_space<vmem>>, vector<1x1x128xf32>
    %77 = vector.shape_cast %76 : vector<1x1x128xf32> to vector<1x128xf32>
    %78 = vector.broadcast %77 : vector<1x128xf32> to vector<8x128xf32>
    %79 = arith.mulf %75, %78 : vector<8x128xf32>
    %c0_47 = arith.constant 0 : index
    %c1 = arith.constant 1 : index
    %c0_48 = arith.constant 0 : index
    %80 = vector.load %arg12[%c0_47, %c1, %c0_48] : memref<2x3x128xf32, #tpu.memory_space<vmem>>, vector<1x1x128xf32>
    %81 = vector.shape_cast %80 : vector<1x1x128xf32> to vector<1x128xf32>
    %82 = vector.broadcast %81 : vector<1x128xf32> to vector<8x128xf32>
    %83 = arith.addf %79, %82 : vector<8x128xf32>
    %cst_49 = arith.constant 0.000000e+00 : f32
    %84 = vector.broadcast %cst_49 : f32 to vector<8x128xf32>
    %85 = arith.maximumf %83, %84 : vector<8x128xf32>
    %c0_50 = arith.constant 0 : index
    %c0_51 = arith.constant 0 : index
    %c0_52 = arith.constant 0 : index
    %86 = vector.load %arg11[%c0_50, %c0_51, %c0_52] : memref<2x128x128xf32, #tpu.memory_space<vmem>>, vector<1x128x128xf32>
    %87 = vector.shape_cast %86 : vector<1x128x128xf32> to vector<128x128xf32>
    %cst_53 = arith.constant dense<0.000000e+00> : vector<8x128xf32>
    %88 = tpu.matmul %85, %87, %cst_53 {dimension_numbers = #tpu.dot_dimension_numbers<[1], [0], [0], [1], [0, 0, 1, 1], [], []>} : vector<8x128xf32>, vector<128x128xf32>, vector<8x128xf32> -> vector<8x128xf32>
    %89 = arith.addf %57, %88 : vector<8x128xf32>
    %c0_54 = arith.constant 0 : index
    %c2 = arith.constant 2 : index
    %c0_55 = arith.constant 0 : index
    %90 = vector.load %arg12[%c0_54, %c2, %c0_55] : memref<2x3x128xf32, #tpu.memory_space<vmem>>, vector<1x1x128xf32>
    %91 = vector.shape_cast %90 : vector<1x1x128xf32> to vector<1x128xf32>
    %92 = vector.broadcast %91 : vector<1x128xf32> to vector<8x128xf32>
    %93 = arith.addf %89, %92 : vector<8x128xf32>
    %cst_56 = arith.constant dense<0.000000e+00> : vector<8xf32>
    %94 = vector.multi_reduction <add>, %93, %cst_56 [1] : vector<8x128xf32> to vector<8xf32>
    %95 = vector.shape_cast %94 : vector<8xf32> to vector<8x1xf32>
    %cst_57 = arith.constant 1.280000e+02 : f32
    %96 = vector.broadcast %cst_57 : f32 to vector<8x1xf32>
    %97 = arith.divf %95, %96 : vector<8x1xf32>
    %98 = vector.broadcast %97 : vector<8x1xf32> to vector<8x128xf32>
    %99 = arith.subf %93, %98 : vector<8x128xf32>
    %100 = arith.mulf %99, %99 : vector<8x128xf32>
    %cst_58 = arith.constant dense<0.000000e+00> : vector<8xf32>
    %101 = vector.multi_reduction <add>, %100, %cst_58 [1] : vector<8x128xf32> to vector<8xf32>
    %102 = vector.shape_cast %101 : vector<8xf32> to vector<8x1xf32>
    %cst_59 = arith.constant 1.280000e+02 : f32
    %103 = vector.broadcast %cst_59 : f32 to vector<8x1xf32>
    %104 = arith.divf %102, %103 : vector<8x1xf32>
    %105 = vector.broadcast %97 : vector<8x1xf32> to vector<8x128xf32>
    %106 = arith.subf %93, %105 : vector<8x128xf32>
    %cst_60 = arith.constant 9.99999974E-6 : f32
    %107 = vector.broadcast %cst_60 : f32 to vector<8x1xf32>
    %108 = arith.addf %104, %107 : vector<8x1xf32>
    %109 = math.rsqrt %108 : vector<8x1xf32>
    %110 = vector.broadcast %109 : vector<8x1xf32> to vector<8x128xf32>
    %111 = arith.mulf %106, %110 : vector<8x128xf32>
    %c1_61 = arith.constant 1 : index
    %c0_62 = arith.constant 0 : index
    %c0_63 = arith.constant 0 : index
    %112 = vector.load %arg12[%c1_61, %c0_62, %c0_63] : memref<2x3x128xf32, #tpu.memory_space<vmem>>, vector<1x1x128xf32>
    %113 = vector.shape_cast %112 : vector<1x1x128xf32> to vector<1x128xf32>
    %114 = vector.broadcast %113 : vector<1x128xf32> to vector<8x128xf32>
    %115 = arith.mulf %111, %114 : vector<8x128xf32>
    %c1_64 = arith.constant 1 : index
    %c1_65 = arith.constant 1 : index
    %c0_66 = arith.constant 0 : index
    %116 = vector.load %arg12[%c1_64, %c1_65, %c0_66] : memref<2x3x128xf32, #tpu.memory_space<vmem>>, vector<1x1x128xf32>
    %117 = vector.shape_cast %116 : vector<1x1x128xf32> to vector<1x128xf32>
    %118 = vector.broadcast %117 : vector<1x128xf32> to vector<8x128xf32>
    %119 = arith.addf %115, %118 : vector<8x128xf32>
    %cst_67 = arith.constant 0.000000e+00 : f32
    %120 = vector.broadcast %cst_67 : f32 to vector<8x128xf32>
    %121 = arith.maximumf %119, %120 : vector<8x128xf32>
    %c1_68 = arith.constant 1 : index
    %c0_69 = arith.constant 0 : index
    %c0_70 = arith.constant 0 : index
    %122 = vector.load %arg11[%c1_68, %c0_69, %c0_70] : memref<2x128x128xf32, #tpu.memory_space<vmem>>, vector<1x128x128xf32>
    %123 = vector.shape_cast %122 : vector<1x128x128xf32> to vector<128x128xf32>
    %cst_71 = arith.constant dense<0.000000e+00> : vector<8x128xf32>
    %124 = tpu.matmul %121, %123, %cst_71 {dimension_numbers = #tpu.dot_dimension_numbers<[1], [0], [0], [1], [0, 0, 1, 1], [], []>} : vector<8x128xf32>, vector<128x128xf32>, vector<8x128xf32> -> vector<8x128xf32>
    %125 = arith.addf %93, %124 : vector<8x128xf32>
    %c1_72 = arith.constant 1 : index
    %c2_73 = arith.constant 2 : index
    %c0_74 = arith.constant 0 : index
    %126 = vector.load %arg12[%c1_72, %c2_73, %c0_74] : memref<2x3x128xf32, #tpu.memory_space<vmem>>, vector<1x1x128xf32>
    %127 = vector.shape_cast %126 : vector<1x1x128xf32> to vector<1x128xf32>
    %128 = vector.broadcast %127 : vector<1x128xf32> to vector<8x128xf32>
    %129 = arith.addf %125, %128 : vector<8x128xf32>
    %cst_75 = arith.constant 0.000000e+00 : f32
    %130 = vector.broadcast %cst_75 : f32 to vector<8x128xf32>
    %131 = arith.maximumf %129, %130 : vector<8x128xf32>
    %c0_76 = arith.constant 0 : index
    %c0_77 = arith.constant 0 : index
    %132 = vector.load %arg13[%c0_76, %c0_77] : memref<128x16xf32, #tpu.memory_space<vmem>>, vector<128x16xf32>
    %cst_78 = arith.constant dense<0.000000e+00> : vector<8x16xf32>
    %133 = tpu.matmul %131, %132, %cst_78 {dimension_numbers = #tpu.dot_dimension_numbers<[1], [0], [0], [1], [0, 0, 1, 1], [], []>} : vector<8x128xf32>, vector<128x16xf32>, vector<8x16xf32> -> vector<8x16xf32>
    %c0_79 = arith.constant 0 : index
    %c0_80 = arith.constant 0 : index
    %134 = vector.load %arg14[%c0_79, %c0_80] : memref<1x16xf32, #tpu.memory_space<vmem>>, vector<1x16xf32>
    %135 = vector.broadcast %134 : vector<1x16xf32> to vector<8x16xf32>
    %136 = arith.addf %133, %135 : vector<8x16xf32>
    %c0_81 = arith.constant 0 : index
    %c0_82 = arith.constant 0 : index
    %137 = vector.load %arg15[%c0_81, %c0_82] : memref<8x16xf32, #tpu.memory_space<vmem>>, vector<8x16xf32>
    tpu.vector_store %arg15[%c0_81, %c0_82], %136 {strides = array<i32>} : memref<8x16xf32, #tpu.memory_space<vmem>>, vector<8x16xf32>,
    return
  }
}

</mosaic_0001>

<bundles_post_ra>
// kernel: denoiser_forward.1
= control target key start
LH: loop header
LB: loop body
LE: loop exit
PB: predicated region body
PF: predicated region fallthrough
CT: control target
= control target key end

     0   :  { %vm150_vm0 = vcmask 64512   ;;  %vm59_vm1 = vcmask 195584   ;;  %s1016_s0 = inlined_call_operand.vmem [shape: f32[8,24], index: 0, kind: input, shape index: {}]   ;;  %s1017_s1 = inlined_call_operand.vmem [shape: f32[8,8], index: 1, kind: input, shape index: {}]   ;;  %s1018_s2 = inlined_call_operand.vmem [shape: f32[8,16], index: 2, kind: input, shape index: {}]   ;;  %s1019_s3 = inlined_call_operand.vmem [shape: f32[24,128], index: 3, kind: input, shape index: {}]   ;;  %s1020_s4 = inlined_call_operand.vmem [shape: f32[1,128], index: 4, kind: input, shape index: {}]   ;;  %s1021_s5 = inlined_call_operand.vmem [shape: f32[8,64], index: 5, kind: input, shape index: {}]   ;;  %s1022_s6 = inlined_call_operand.vmem [shape: f32[1,64], index: 6, kind: input, shape index: {}]   ;;  %s1023_s7 = inlined_call_operand.vmem [shape: f32[128,32], index: 7, kind: input, shape index: {}]   ;;  %s1024_s8 = inlined_call_operand.vmem [shape: f32[64,32], index: 8, kind: input, shape index: {}]   ;;  %s1025_s9 = inlined_call_operand.vmem [shape: f32[80,128], index: 9, kind: input, shape index: {}]   ;;  %s1026_s10 = inlined_call_operand.vmem [shape: f32[1,128], index: 10, kind: input, shape index: {}]   ;;  %s1027_s11 = inlined_call_operand.vmem [shape: f32[2,128,128], index: 11, kind: input, shape index: {}]   ;;  %s1028_s12 = inlined_call_operand.vmem [shape: f32[2,3,128], index: 12, kind: input, shape index: {}]   ;;  %s1029_s13 = inlined_call_operand.vmem [shape: f32[128,16], index: 13, kind: input, shape index: {}]   ;;  %s1030_s14 = inlined_call_operand.vmem [shape: f32[1,16], index: 14, kind: input, shape index: {}]   ;;  %s1031_s15 = inlined_call_operand.hbm [shape: f32[8,16], index: 15, kind: output, shape index: {}]  }
   0x1   :  { %v54_v0 = vld [vmem:[%s1019_s3 + $0x10] sm:$0xff]  ;;  %v145_v1 = vld [vmem:[%s1021_s5] sm:$0xff]  ;;  %v53_v3 = vld [vmem:[%s1019_s3 + $0x8] sm:$0xff] }
   0x2   :  { %v144_v2 = vld [vmem:[%s1017_s1] sm:$0xff]  ;;  %76 = vmatpush.msra.mxu0 %v54_v0  ;;  %169 = vmatpush.msra.mxu2 %v145_v1 }
   0x3   :  { %v52_v4 = vld [vmem:[%s1019_s3] sm:$0xff]  ;;  %522 = vmatmul.msk.f32.vlgmr.msra.gmra.mxu2 %vm150_vm0, %v144_v2 }
   0x4   :  { %v51_v5 = vld [vmem:[%s1016_s0] sm:$0xff]  ;;  %77 = vmatpush.msra.mxu0 %v53_v3 }
   0x6   :  { %78 = vmatpush.msra.mxu0 %v52_v4 }
   0x7   :  { %20 = vsyncpa [#allocation3], 0  ;;  %520 = vmatmul.msk.f32.vlgmr.msra.gmra.mxu0 %vm59_vm1, %v51_v5  ;;  %v123_v6 = vld [vmem:[%s1023_s7 + $0x78] sm:$0xff]  ;;  %v122_v7 = vld [vmem:[%s1023_s7 + $0x70] sm:$0xff]  ;;  %vm207_vm11 = vcmask 523264   ;;  %vm262_vm13 = vcmask 130048  }
   0x8   :  { %124 = vmatpush.msra.mxu1 %v123_v6  ;;  %v121_v8 = vld [vmem:[%s1023_s7 + $0x68] sm:$0xff]  ;;  %v120_v9 = vld [vmem:[%s1023_s7 + $0x60] sm:$0xff]  ;;  %v119_v10 = vld [vmem:[%s1023_s7 + $0x58] sm:$0xff]  ;;  %vm238_vm14 = vcmask 261120   ;;  %s600_s25 = smov [#allocation2]  }
   0x9   :  { %v118_v11 = vld [vmem:[%s1023_s7 + $0x50] sm:$0xff]  ;;  %v117_v12 = vld [vmem:[%s1023_s7 + $0x48] sm:$0xff]  ;;  %v116_v13 = vld [vmem:[%s1023_s7 + $0x40] sm:$0xff]  ;;  %s509_s26 = sshll.u32 %s600_s25, 4  ;;  %s510_s26 = int_to_ptr.vmem [resolvable:$true] %s509_s26 }
   0xa   :  { %125 = vmatpush.msra.mxu1 %v122_v7  ;;  %v206_v14 = vld [vmem:[%s1024_s8 + $0x38] sm:$0xff]  ;;  %v205_v16 = vld [vmem:[%s1024_s8 + $0x30] sm:$0xff]  ;;  %v204_v17 = vld [vmem:[%s1024_s8 + $0x28] sm:$0xff] }
   0xb   :  { %v115_v15 = vld [vmem:[%s1023_s7 + $0x38] sm:$0xff]  ;;  %219 = vmatpush.msra.mxu3 %v206_v14  ;;  %v114_v18 = vld [vmem:[%s1023_s7 + $0x30] sm:$0xff]  ;;  %v203_v19 = vld [vmem:[%s1024_s8 + $0x20] sm:$0xff] }
   0xc   :  { %126 = vmatpush.msra.mxu1 %v121_v8  ;;  %v113_v20 = vld [vmem:[%s1023_s7 + $0x28] sm:$0xff]  ;;  %v549_v21 = vld [vmem:[%s1020_s4] ss:$0 sm:$0xff]  ;;  %v202_v22 = vld [vmem:[%s1024_s8 + $0x18] sm:$0xff] }
   0xd   :  { %220 = vmatpush.msra.mxu3 %v205_v16  ;;  %v112_v23 = vld [vmem:[%s1023_s7 + $0x20] sm:$0xff]  ;;  %v201_v25 = vld [vmem:[%s1024_s8 + $0x10] sm:$0xff]  ;;  %v111_v27 = vld [vmem:[%s1023_s7 + $0x18] sm:$0xff] }
   0xe   :  { %127 = vmatpush.msra.mxu1 %v120_v9  ;;  %v550_v24 = vld [vmem:[%s1022_s6] ss:$0 sm:$0xff]  ;;  %v200_v29 = vld [vmem:[%s1024_s8 + $0x8] sm:$0xff]  ;;  %v110_v31 = vld [vmem:[%s1023_s7 + $0x10] sm:$0xff] }
   0xf   :  { %221 = vmatpush.msra.mxu3 %v204_v17  ;;  %v109_v34 = vld [vmem:[%s1023_s7 + $0x8] sm:$0xff]  ;;  %v108_v37 = vld [vmem:[%s1023_s7] sm:$0xff]  ;;  %v287_v44 = vld [vmem:[%s1025_s9 + $0x38] sm:$0xff] }
  0x10   :  { %128 = vmatpush.msra.mxu1 %v119_v10  ;;  %v199_v39 = vld [vmem:[%s1024_s8] sm:$0xff]  ;;  %v289_v40 = vld [vmem:[%s1025_s9 + $0x48] sm:$0xff] }
  0x11   :  { %222 = vmatpush.msra.mxu3 %v203_v19  ;;  %v288_v41 = vld [vmem:[%s1025_s9 + $0x40] sm:$0xff]  ;;  %305 = vmatpush.msrb.mxu2 %v289_v40  ;;  %v237_v16 = vld [vmem:[%s1025_s9 + $0x28] sm:$0xff] }
  0x12   :  { %129 = vmatpush.msra.mxu1 %v118_v11  ;;  %v233_v17 = vld [vmem:[%s1025_s9 + $0x8] sm:$0xff]  ;;  %v232_v19 = vld [vmem:[%s1025_s9] sm:$0xff] }
  0x13   :  { %223 = vmatpush.msra.mxu3 %v202_v22  ;;  %306 = vmatpush.msrb.mxu2 %v288_v41  ;;  %v231_v22 = vld [vmem:[%s1018_s2] sm:$0xff] }
  0x14   :  { %130 = vmatpush.msra.mxu1 %v117_v12  ;;  %280 = vmatpush.msrb.mxu0 %v233_v17 }
  0x15   :  { %224 = vmatpush.msra.mxu3 %v201_v25  ;;  %307 = vmatpush.msrb.mxu2 %v287_v44  ;;  %v367_v44 = vld [vmem:[%s1027_s11 + $0x70] sm:$0xff] }
  0x16   :  { %131 = vmatpush.msra.mxu1 %v116_v13  ;;  %281 = vmatpush.msrb.mxu0 %v232_v19 }
  0x17   :  { %225 = vmatpush.msra.mxu3 %v200_v29  ;;  %526 = vmatmul.msk.f32.vlgmr.msrb.gmra.mxu0 %vm262_vm13, %v231_v22  ;;  %v542_v22 = vld [vmem:[%s1027_s11 + $0xe0] sm:$0xff] }
  0x18   :  { %132 = vmatpush.msra.mxu1 %v115_v15  ;;  %v286_v15 = vld [vmem:[%s1025_s9 + $0x30] sm:$0xff] }
  0x19   :  { %226 = vmatpush.msra.mxu3 %v199_v39  ;;  %308 = vmatpush.msrb.mxu2 %v286_v15  ;;  %v545_v15 = vld [vmem:[%s1027_s11 + $0xf8] sm:$0xff] }
  0x1a   :  { %133 = vmatpush.msra.mxu1 %v114_v18  ;;  %v236_v18 = vld [vmem:[%s1025_s9 + $0x20] sm:$0xff] }
  0x1b   :  { %438 = vmatpush.msrb.mxu3 %v545_v15 }
  0x1c   :  { %134 = vmatpush.msra.mxu1 %v113_v20  ;;  %v235_v20 = vld [vmem:[%s1025_s9 + $0x18] sm:$0xff] }
  0x1e   :  { %135 = vmatpush.msra.mxu1 %v112_v23 }
  0x20   :  { %136 = vmatpush.msra.mxu1 %v111_v27 }
  0x22   :  { %137 = vmatpush.msra.mxu1 %v110_v31 }
  0x24   :  { %138 = vmatpush.msra.mxu1 %v109_v34 }
  0x26   :  { %139 = vmatpush.msra.mxu1 %v108_v37 }
  0x28   :  { %254 = vmatpush.msrb.mxu1 %v237_v16 }
  0x2a   :  { %255 = vmatpush.msrb.mxu1 %v236_v18 }
  0x2c   :  { %256 = vmatpush.msrb.mxu1 %v235_v20  ;;  %v544_v20 = vld [vmem:[%s1027_s11 + $0xf0] sm:$0xff] }
  0x2d   :  { %439 = vmatpush.msrb.mxu3 %v544_v20 }
  0x84   :  { %v80_v26 = vpop.f32.mrf.mxu0 }
  0x85   :  { %v762_v28 = vadd.f32 %v549_v21, %v80_v26  ;;  %v234_v21 = vld [vmem:[%s1025_s9 + $0x10] sm:$0xff] }
  0x86   :  { %v171_v30 = vpop.f32.mrf.mxu2  ;;  %257 = vmatpush.msrb.mxu1 %v234_v21  ;;  %v543_v21 = vld [vmem:[%s1027_s11 + $0xe8] sm:$0xff] }
  0x87   :  { %v83_v32 = vmin.f32 %v762_v28, 20.0  ;;  %v771_v33 = vadd.f32 %v550_v24, %v171_v30  ;;  %vm105_vm10 = vcmp.gt.f32.partialorder %v762_v28, 20.0  ;;  %440 = vmatpush.msrb.mxu3 %v543_v21 }
  0x89   :  { %v84_v35 = vmul.f32 1.442695, %v83_v32  ;;  %v174_v36 = vmin.f32 %v771_v33, 20.0  ;;  %vm196_vm12 = vcmp.gt.f32.partialorder %v771_v33, 20.0  ;;  %v599_v32 = vmov 128.0   ;;  %441 = vmatpush.msrb.mxu3 %v542_v22 }
  0x8b   :  { %559 = vpow2.f32 %v84_v35  ;;  %v175_v38 = vmul.f32 1.442695, %v174_v36 }
  0x8d   :  { %561 = vpow2.f32 %v175_v38 }
  0x91   :  { %v560_v42 = vpop.eup %559 }
  0x92   :  { %v86_v43 = vadd.f32 1.0, %v560_v42 }
  0x93   :  { %v562_v45 = vpop.eup %561 }
  0x94   :  { %v177_v46 = vadd.f32 1.0, %v562_v45  ;;  %v87_v47 = vmul.f32 %v86_v43, %v86_v43  ;;  %v283_v25 = vpop.f32.mrf.mxu0  ;;  %v366_v45 = vld [vmem:[%s1027_s11 + $0x68] sm:$0xff] }
  0x96   :  { %v178_v48 = vmul.f32 %v177_v46, %v177_v46  ;;  %v89_v49 = vadd.f32 1.0, %v87_v47  ;;  %v521_v0 = vadd.f32 -1.0, %v87_v47  ;;  %v365_v46 = vld [vmem:[%s1027_s11 + $0x60] sm:$0xff]  ;;  %v364_v47 = vld [vmem:[%s1027_s11 + $0x58] sm:$0xff] }
  0x98   :  { %v180_v50 = vadd.f32 1.0, %v178_v48  ;;  %563 = vrcp.f32 %v89_v49  ;;  %v101_v56 = vand.u32 2147483648, %v89_v49  ;;  %v99_v58 = vand.u32 2147483647, %v89_v49 }
  0x99   :  { %vm95_vm3 = vweird.f32 %v89_v49  ;;  %v523_v7 = vadd.f32 -1.0, %v178_v48  ;;  %v363_v48 = vld [vmem:[%s1027_s11 + $0x50] sm:$0xff] }
  0x9a   :  { %565 = vrcp.f32 %v180_v50  ;;  %v192_v60 = vand.u32 2147483648, %v180_v50  ;;  %v190_v63 = vand.u32 2147483647, %v180_v50  ;;  %v102_v1 = vor.u32 1.1754944e-38, %v101_v56  ;;  %v355_v56 = vld [vmem:[%s1027_s11 + $0x10] sm:$0xff] }
  0x9b   :  { %vm100_vm6 = vcmp.eq.f32.partialorder %v99_v58, 8.507059e+37  ;;  %vm186_vm7 = vweird.f32 %v180_v50  ;;  %567 = vrcp.f32 %v599_v32  ;;  %v353_v58 = vld [vmem:[%s1027_s11] sm:$0xff]  ;;  %v532_v32 = vld [vmem:[%s1027_s11 + $0x90] sm:$0xff] }
  0x9c   :  { %v193_v5 = vor.u32 1.1754944e-38, %v192_v60  ;;  %vm191_vm9 = vcmp.eq.f32.partialorder %v190_v63, 8.507059e+37 }
  0x9e   :  { %v564_v51 = vpop.eup %563 }
  0x9f   :  { %v91_v52 = vmul.f32 %v564_v51, %v89_v49  ;;  %vm96_vm2 = vweird.f32 %v564_v51  ;;  %v362_v49 = vld [vmem:[%s1027_s11 + $0x48] sm:$0xff] }
  0xa0   :  { %v566_v53 = vpop.eup %565  ;;  %vm97_vm5 = vmor %vm95_vm3, %vm96_vm2 }
  0xa1   :  { %v92_v54 = vsub.f32 1.0, %v91_v52  ;;  %v182_v55 = vmul.f32 %v566_v53, %v180_v50  ;;  %vm187_vm4 = vweird.f32 %v566_v53  ;;  %v568_v34 = vpop.eup %567  ;;  %v361_v50 = vld [vmem:[%s1027_s11 + $0x40] sm:$0xff]  ;;  %v359_v52 = vld [vmem:[%s1027_s11 + $0x30] sm:$0xff] }
  0xa2   :  { %vm188_vm8 = vmor %vm186_vm7, %vm187_vm4  ;;  %v322_v35 = vmul.f32 128.0, %v568_v34  ;;  %vm326_vm15 = vweird.f32 %v568_v34 }
  0xa3   :  { %v93_v57 = vmul.f32 %v564_v51, %v92_v54  ;;  %v183_v59 = vsub.f32 1.0, %v182_v55  ;;  %v357_v54 = vld [vmem:[%s1027_s11 + $0x20] sm:$0xff]  ;;  %v356_v55 = vld [vmem:[%s1027_s11 + $0x18] sm:$0xff] }
  0xa4   :  { %v323_v36 = vsub.f32 1.0, %v322_v35  ;;  %v478_v35 = vld [vmem:[%s1029_s13 + $0x78] sm:$0xff] }
  0xa5   :  { %v94_v61 = vadd.f32 %v564_v51, %v93_v57  ;;  %v184_v62 = vmul.f32 %v566_v53, %v183_v59  ;;  %v354_v57 = vld [vmem:[%s1027_s11 + $0x8] sm:$0xff]  ;;  %483 = vmatpush.msra.mxu2 %v478_v35 }
  0xa6   :  { %v324_v37 = vmul.f32 %v568_v34, %v323_v36  ;;  %v477_v36 = vld [vmem:[%s1029_s13 + $0x70] sm:$0xff] }
  0xa7   :  { %v98_v2 = vsel %vm97_vm5, %v564_v51, %v94_v61  ;;  %v185_v3 = vadd.f32 %v566_v53, %v184_v62  ;;  %v360_v51 = vld [vmem:[%s1027_s11 + $0x38] sm:$0xff]  ;;  %484 = vmatpush.msra.mxu2 %v477_v36 }
  0xa8   :  { %v103_v4 = vsel %vm100_vm6, %v102_v1, %v98_v2  ;;  %v325_v38 = vadd.f32 %v568_v34, %v324_v37 }
  0xa9   :  { %v104_v6 = vmul.f32 %v521_v0, %v103_v4  ;;  %v189_v8 = vsel %vm188_vm8, %v566_v53, %v185_v3  ;;  %v358_v53 = vld [vmem:[%s1027_s11 + $0x28] sm:$0xff]  ;;  %v552_v4 = vld [vmem:[%s1028_s12] ss:$0 sm:$0xff] }
  0xaa   :  { %v194_v9 = vsel %vm191_vm9, %v193_v5, %v189_v8  ;;  %v832_v39 = vsel %vm326_vm15, %v568_v34, %v325_v38  ;;  %v530_v34 = vld [vmem:[%s1027_s11 + $0x80] sm:$0xff] }
  0xab   :  { %v106_v10 = vmul.f32 %v104_v6, %v762_v28  ;;  %v195_v11 = vmul.f32 %v523_v7, %v194_v9  ;;  %v553_v7 = vld [vmem:[%s1028_s12 + $0x1] ss:$0 sm:$0xff] }
  0xad   :  { %v107_v12 = vsel %vm105_vm10, %v762_v28, %v106_v10  ;;  %v197_v13 = vmul.f32 %v195_v11, %v771_v33  ;;  %v551_v28 = vld [vmem:[%s1026_s10] ss:$0 sm:$0xff]  ;;  %v554_v11 = vld [vmem:[%s1028_s12 + $0x2] ss:$0 sm:$0xff] }
  0xae   :  { %140 = vmatmul.f32.vlgmr.msra.gmra.mxu1 %v107_v12 }
  0xaf   :  { %v198_v14 = vsel %vm196_vm12, %v771_v33, %v197_v13  ;;  %v368_v33 = vld [vmem:[%s1027_s11 + $0x78] sm:$0xff] }
  0xb0   :  { %524 = vmatmul.msk.f32.vlgmr.msra.gmra.mxu3 %vm207_vm11, %v198_v14  ;;  %369 = vmatpush.msra.mxu0 %v368_v33  ;;  %v531_v33 = vld [vmem:[%s1027_s11 + $0x88] sm:$0xff] }
  0xb2   :  { %370 = vmatpush.msra.mxu0 %v367_v44  ;;  %v472_v44 = vld [vmem:[%s1029_s13 + $0x48] sm:$0xff] }
  0xb4   :  { %371 = vmatpush.msra.mxu0 %v366_v45 }
  0xb6   :  { %372 = vmatpush.msra.mxu0 %v365_v46  ;;  %v471_v46 = vld [vmem:[%s1029_s13 + $0x40] sm:$0xff] }
  0xb8   :  { %373 = vmatpush.msra.mxu0 %v364_v47 }
  0xba   :  { %374 = vmatpush.msra.mxu0 %v363_v48  ;;  %v470_v48 = vld [vmem:[%s1029_s13 + $0x38] sm:$0xff] }
  0xbc   :  { %375 = vmatpush.msra.mxu0 %v362_v49 }
  0xbe   :  { %376 = vmatpush.msra.mxu0 %v361_v50  ;;  %v469_v50 = vld [vmem:[%s1029_s13 + $0x30] sm:$0xff] }
  0xc0   :  { %377 = vmatpush.msra.mxu0 %v360_v51 }
  0xc2   :  { %378 = vmatpush.msra.mxu0 %v359_v52  ;;  %v468_v52 = vld [vmem:[%s1029_s13 + $0x28] sm:$0xff] }
  0xc4   :  { %379 = vmatpush.msra.mxu0 %v358_v53 }
  0xc6   :  { %380 = vmatpush.msra.mxu0 %v357_v54  ;;  %v467_v54 = vld [vmem:[%s1029_s13 + $0x20] sm:$0xff] }
  0xc8   :  { %381 = vmatpush.msra.mxu0 %v356_v55 }
  0xca   :  { %382 = vmatpush.msra.mxu0 %v355_v56  ;;  %v555_v56 = vld [vmem:[%s1028_s12 + $0x4] ss:$0 sm:$0xff] }
  0xcc   :  { %383 = vmatpush.msra.mxu0 %v354_v57 }
  0xce   :  { %384 = vmatpush.msra.mxu0 %v353_v58 }
 0x12b   :  { %v141_v23 = vpop.f32.mrf.mxu1 }
 0x12c   :  { %527 = vmatmul.msk.f32.vlgmr.msrb.gmra.mxu2 %vm238_vm14, %v141_v23  ;;  %v541_v23 = vld [vmem:[%s1027_s11 + $0xd8] sm:$0xff] }
 0x12d   :  { %442 = vmatpush.msrb.mxu3 %v541_v23 }
 0x133   :  { %v228_v24 = vpop.f32.mrf.mxu3 }
 0x134   :  { %525 = vmatmul.msk.f32.vlgmr.msrb.gmra.mxu1 %vm238_vm14, %v228_v24  ;;  %v540_v24 = vld [vmem:[%s1027_s11 + $0xd0] sm:$0xff] }
 0x135   :  { %443 = vmatpush.msrb.mxu3 %v540_v24 }
 0x1af   :  { %v310_v29 = vpop.f32.mrf.mxu2 }
 0x1b1   :  { %v259_v26 = vpop.f32.mrf.mxu1 }
 0x1b2   :  { %v284_v27 = vadd.f32 %v283_v25, %v259_v26  ;;  %v539_v25 = vld [vmem:[%s1027_s11 + $0xc8] sm:$0xff]  ;;  %v538_v26 = vld [vmem:[%s1027_s11 + $0xc0] sm:$0xff] }
 0x1b3   :  { %444 = vmatpush.msrb.mxu3 %v539_v25 }
 0x1b4   :  { %v313_v30 = vadd.f32 %v310_v29, %v284_v27  ;;  %v537_v27 = vld [vmem:[%s1027_s11 + $0xb8] sm:$0xff]  ;;  %v535_v29 = vld [vmem:[%s1027_s11 + $0xa8] sm:$0xff] }
 0x1b5   :  { %445 = vmatpush.msrb.mxu3 %v538_v26 }
 0x1b6   :  { %v826_v31 = vadd.f32 %v551_v28, %v313_v30  ;;  %v536_v28 = vld [vmem:[%s1027_s11 + $0xb0] sm:$0xff]  ;;  %v534_v30 = vld [vmem:[%s1027_s11 + $0xa0] sm:$0xff] }
 0x1b7   :  { %446 = vmatpush.msrb.mxu3 %v537_v27 }
 0x1b8   :  { %319 = vadd.xlane.f32.xlu0 %v826_v31 }
 0x1b9   :  { %447 = vmatpush.msrb.mxu3 %v536_v28 }
 0x1bb   :  { %448 = vmatpush.msrb.mxu3 %v535_v29 }
 0x1bd   :  { %449 = vmatpush.msrb.mxu3 %v534_v30 }
 0x22b   :  { %v320_v40 = vpop.xlane.xlu0 %319 }
 0x22c   :  { %v328_v41 = vmul.f32 %v832_v39, %v320_v40  ;;  %v476_v40 = vld [vmem:[%s1029_s13 + $0x68] sm:$0xff] }
 0x22d   :  { %485 = vmatpush.msra.mxu2 %v476_v40 }
 0x22e   :  { %v329_v42 = vsub.f32 %v826_v31, %v328_v41 }
 0x230   :  { %v330_v43 = vmul.f32 %v329_v42, %v329_v42 }
 0x232   :  { %331 = vadd.xlane.f32.xlu0 %v330_v43  ;;  %v474_v43 = vld [vmem:[%s1029_s13 + $0x58] sm:$0xff] }
 0x2a5   :  { %v332_v59 = vpop.xlane.xlu0 %331 }
 0x2a6   :  { %v333_v60 = vmul.f32 %v332_v59, %v832_v39  ;;  %v556_v59 = vld [vmem:[%s1028_s12 + $0x5] ss:$0 sm:$0xff] }
 0x2a8   :  { %v334_v61 = vadd.f32 1e-05, %v333_v60 }
 0x2aa   :  { %569 = vrsqrt.f32 %v334_v61  ;;  %vm341_vm1 = vweird.f32 %v334_v61 }
 0x2b0   :  { %v570_v62 = vpop.eup %569 }
 0x2b1   :  { %v336_v63 = vmul.f32 %v570_v62, %v334_v61  ;;  %vm342_vm0 = vweird.f32 %v570_v62 }
 0x2b2   :  { %vm343_vm2 = vmor %vm341_vm1, %vm342_vm0 }
 0x2b3   :  { %v337_v0 = vmul.f32 %v570_v62, %v336_v63  ;;  %v466_v63 = vld [vmem:[%s1029_s13 + $0x18] sm:$0xff] }
 0x2b5   :  { %v338_v1 = vmul.f32 0.5, %v337_v0  ;;  %v465_v0 = vld [vmem:[%s1029_s13 + $0x10] sm:$0xff] }
 0x2b7   :  { %v339_v2 = vsub.f32 1.5, %v338_v1  ;;  %v464_v1 = vld [vmem:[%s1029_s13 + $0x8] sm:$0xff] }
 0x2b9   :  { %v340_v3 = vmul.f32 %v570_v62, %v339_v2  ;;  %v463_v2 = vld [vmem:[%s1029_s13] sm:$0xff] }
 0x2bb   :  { %v344_v5 = vsel %vm343_vm2, %v570_v62, %v340_v3  ;;  %v557_v3 = vld [vmem:[%s1028_s12 + $0x6] ss:$0 sm:$0xff] }
 0x2bc   :  { %v345_v6 = vmul.f32 %v344_v5, %v329_v42  ;;  %v475_v42 = vld [vmem:[%s1029_s13 + $0x60] sm:$0xff] }
 0x2bd   :  { %486 = vmatpush.msra.mxu2 %v475_v42 }
 0x2be   :  { %v348_v8 = vmul.f32 %v552_v4, %v345_v6 }
 0x2bf   :  { %487 = vmatpush.msra.mxu2 %v474_v43 }
 0x2c0   :  { %v351_v9 = vadd.f32 %v553_v7, %v348_v8  ;;  %v558_v8 = vld [vmem:[%s1030_s14] ss:$0 sm:$0xff] }
 0x2c2   :  { %v352_v10 = vmax.f32 %v351_v9, 0.0 }
 0x2c4   :  { %385 = vmatmul.f32.vlgmr.msra.gmra.mxu0 %v352_v10 }
 0x341   :  { %v386_v12 = vpop.f32.mrf.mxu0 }
 0x342   :  { %v389_v13 = vadd.f32 %v386_v12, %v826_v31  ;;  %v533_v31 = vld [vmem:[%s1027_s11 + $0x98] sm:$0xff] }
 0x343   :  { %450 = vmatpush.msrb.mxu3 %v533_v31 }
 0x344   :  { %v892_v14 = vadd.f32 %v554_v11, %v389_v13 }
 0x345   :  { %451 = vmatpush.msrb.mxu3 %v532_v32 }
 0x346   :  { %393 = vadd.xlane.f32.xlu1 %v892_v14 }
 0x347   :  { %452 = vmatpush.msrb.mxu3 %v531_v33 }
 0x349   :  { %453 = vmatpush.msrb.mxu3 %v530_v34 }
 0x3b9   :  { %v394_v16 = vpop.xlane.xlu1 %393 }
 0x3ba   :  { %v395_v17 = vmul.f32 %v394_v16, %v832_v39 }
 0x3bc   :  { %v900_v18 = vsub.f32 %v892_v14, %v395_v17 }
 0x3be   :  { %v397_v19 = vmul.f32 %v900_v18, %v900_v18 }
 0x3c0   :  { %398 = vadd.xlane.f32.xlu1 %v397_v19 }
 0x433   :  { %v399_v37 = vpop.xlane.xlu1 %398 }
 0x434   :  { %v400_v38 = vmul.f32 %v399_v37, %v832_v39  ;;  %v473_v39 = vld [vmem:[%s1029_s13 + $0x50] sm:$0xff]  ;;  %s511_s13 = sshll.u32 %s1031_s15, 4  ;;  %s512_s13 = int_to_ptr.hbm [resolvable:$true] %s511_s13 }
 0x435   :  { %488 = vmatpush.msra.mxu2 %v473_v39 }
 0x436   :  { %v401_v41 = vadd.f32 1e-05, %v400_v38 }
 0x437   :  { %489 = vmatpush.msra.mxu2 %v472_v44 }
 0x438   :  { %571 = vrsqrt.f32 %v401_v41  ;;  %vm408_vm4 = vweird.f32 %v401_v41 }
 0x439   :  { %490 = vmatpush.msra.mxu2 %v471_v46 }
 0x43b   :  { %491 = vmatpush.msra.mxu2 %v470_v48 }
 0x43d   :  { %492 = vmatpush.msra.mxu2 %v469_v50 }
 0x43e   :  { %v572_v45 = vpop.eup %571 }
 0x43f   :  { %v403_v47 = vmul.f32 %v572_v45, %v401_v41  ;;  %vm409_vm3 = vweird.f32 %v572_v45  ;;  %493 = vmatpush.msra.mxu2 %v468_v52 }
 0x440   :  { %vm410_vm5 = vmor %vm408_vm4, %vm409_vm3 }
 0x441   :  { %v404_v49 = vmul.f32 %v572_v45, %v403_v47  ;;  %494 = vmatpush.msra.mxu2 %v467_v54 }
 0x443   :  { %v405_v51 = vmul.f32 0.5, %v404_v49  ;;  %495 = vmatpush.msra.mxu2 %v466_v63 }
 0x445   :  { %v406_v53 = vsub.f32 1.5, %v405_v51  ;;  %496 = vmatpush.msra.mxu2 %v465_v0 }
 0x447   :  { %v407_v55 = vmul.f32 %v572_v45, %v406_v53  ;;  %497 = vmatpush.msra.mxu2 %v464_v1 }
 0x449   :  { %v411_v57 = vsel %vm410_vm5, %v572_v45, %v407_v55  ;;  %498 = vmatpush.msra.mxu2 %v463_v2 }
 0x44a   :  { %v412_v58 = vmul.f32 %v411_v57, %v900_v18 }
 0x44c   :  { %v416_v60 = vmul.f32 %v555_v56, %v412_v58 }
 0x44e   :  { %v419_v61 = vadd.f32 %v556_v59, %v416_v60 }
 0x450   :  { %v420_v62 = vmax.f32 %v419_v61, 0.0 }
 0x452   :  { %454 = vmatmul.f32.vlgmr.msrb.gmra.mxu3 %v420_v62 }
 0x4d5   :  { %v455_v4 = vpop.f32.mrf.mxu3 }
 0x4d6   :  { %v458_v5 = vadd.f32 %v455_v4, %v892_v14 }
 0x4d8   :  { %v461_v6 = vadd.f32 %v557_v3, %v458_v5 }
 0x4da   :  { %v462_v7 = vmax.f32 %v461_v6, 0.0 }
 0x4dc   :  { %499 = vmatmul.f32.vlgmr.msra.gmra.mxu2 %v462_v7 }
 0x55f   :  { %v500_v9 = vpop.f32.mrf.mxu2 }
 0x560   :  { %v501_v10 = vadd.f32 %v558_v8, %v500_v9 }
 0x562   :  { %503 = vst.msk [vmem:[#allocation2] sm:$0xff] %vm262_vm13, %v501_v10 }
 0x563   :  { %514 = dma.vmem_to_hbm [thread:$0]  %s510_s26, 128, %s512_s13, [#allocation3]  }
 0x564   :  { %597 = dma.done.wait [#allocation3], 128  }
 0x565   :  { %598 = vsyncadd [#allocation3], 4294967168 }
 0x566   :  { %519 = vsyncpa [#allocation3], 1 }

</bundles_post_ra>
